<compile_context>
chip_gen: v5e
topology: v5e:2x2
jax: 0.10.0
libtpu: 0.0.40
codegen_flags: <defaults>
</compile_context>

<pallas_src>
import functools

import jax
import jax.numpy as jnp
from jax.experimental import pallas as pl
from jax.experimental.pallas import tpu as pltpu

_LANE = 128


def _round_up(x: int, m: int) -> int:
    return ((x + m - 1) // m) * m


def _mlp_kernel(x_ref, w1_ref, b1_ref, w3_ref, b3_ref, o_ref):
    # Hidden layer: linear1 + ReLU (MXU matmul, full-vreg VPU add/max).
    h = jnp.dot(x_ref[...], w1_ref[...], preferred_element_type=jnp.float32)
    h = jnp.maximum(h + b1_ref[...], 0.0)                 # (TB, Hp) + (1, Hp)
    # Output layer: linear3. Padded lanes of h / w3 are zero so they add 0.
    out = jnp.dot(h, w3_ref[...], preferred_element_type=jnp.float32)
    out = out + b3_ref[...]                               # (TB, Cp)
    # Store only the real C columns; the padded lanes never leave VMEM.
    o_ref[...] = out[:, : o_ref.shape[1]].astype(o_ref.dtype)


def prepare_mlp_params(w1, b1, w3, b3):
    """Pad nn.Linear params to lane-dense layouts ONCE (hoisted out of forward).

    w1: (H, D_in), b1: (H,)   -- nn.Linear(in=D_in, out=H) layout
    w3: (C, H),   b3: (C,)    -- nn.Linear(in=H,    out=C) layout
    Returns (params_tuple, (H, C)); the latter is passed as a static arg.
    """
    H, D_in = w1.shape
    C = w3.shape[0]
    Hp = _round_up(H, _LANE)
    Cp = _round_up(C, _LANE)

    w1_t = jnp.zeros((D_in, Hp), jnp.float32).at[:, :H].set(w1.T.astype(jnp.float32))
    b1_p = jnp.zeros((1, Hp), jnp.float32).at[:, :H].set(b1.astype(jnp.float32))
    w3_t = jnp.zeros((Hp, Cp), jnp.float32).at[:H, :C].set(w3.T.astype(jnp.float32))
    b3_p = jnp.zeros((1, Cp), jnp.float32).at[:, :C].set(b3.astype(jnp.float32))
    return (w1_t, b1_p, w3_t, b3_p), (H, C)


@functools.partial(jax.jit, static_argnames=("dims", "block_b"))
def mlp_forward_prepared(x, params, *, dims, block_b: int = 4096):
    """relu(x @ w1.T + b1) @ w3.T + b3, with pre-padded params."""
    w1_t, b1_p, w3_t, b3_p = params
    H, C = dims
    B, D_in = x.shape
    Hp = w1_t.shape[1]
    Cp = w3_t.shape[1]

    # Batch tile: multiple of 8 (f32 sublane), capped by block_b, and sized so
    # the grid has >= 2 steps whenever B > 16 (feeds both v7x TensorCores via
    # the "parallel" dimension semantics; a no-op on single-TC v5e/v6e).
    TB = min(block_b, max(8, _round_up(pl.cdiv(B, 2), 8)))
    Bp = _round_up(B, TB)

    xp = x.astype(jnp.float32)
    if Bp != B:
        xp = jnp.zeros((Bp, D_in), jnp.float32).at[:B].set(xp)

    grid = (Bp // TB,)

    # VMEM budget: the (TB, D_in) and (TB, C) blocks are stored in (8,128)
    # tiles, so each buffer occupies TB*128*4 bytes regardless of logical
    # width; the pipeline double-buffers them. Weights/biases stay resident.
    row_bytes = _LANE * 4
    vmem_bytes = (
        2 * TB * row_bytes              # x tiles (double-buffered, lane-padded)
        + 2 * TB * row_bytes            # out tiles (double-buffered, lane-padded)
        + (D_in * Hp + Hp * Cp) * 4     # resident weights
        + 4 * 8 * _LANE * 4             # biases (sublane-padded tiles, margin)
    )
    vmem_limit = min(int(vmem_bytes * 1.5) + (2 << 20), 96 << 20)

    # Realistic advisory cost (real H/C, narrow output) so XLA can overlap
    # this small custom call instead of serializing around an inflated cost.
    flops = 2 * B * (D_in * H + H * C)
    bytes_accessed = 4 * (B * D_in + D_in * H + H + H * C + C + B * C)

    out = pl.pallas_call(
        _mlp_kernel,
        out_shape=jax.ShapeDtypeStruct((Bp, C), jnp.float32),
        grid_spec=pltpu.PrefetchScalarGridSpec(
            num_scalar_prefetch=0,
            grid=grid,
            in_specs=[
                pl.BlockSpec((TB, D_in), lambda i: (i, 0)),   # x marches over batch
                pl.BlockSpec((D_in, Hp), lambda i: (0, 0)),   # weights stay VMEM-resident
                pl.BlockSpec((1, Hp), lambda i: (0, 0)),
                pl.BlockSpec((Hp, Cp), lambda i: (0, 0)),
                pl.BlockSpec((1, Cp), lambda i: (0, 0)),
            ],
            # Block last dim == full array dim (C), so the (8,128) rule holds;
            # only the real C columns are ever DMA'd back to HBM.
            out_specs=pl.BlockSpec((TB, C), lambda i: (i, 0)),
        ),
        compiler_params=pltpu.CompilerParams(
            dimension_semantics=("parallel",),   # shard batch tiles across TCs (v7x)
            vmem_limit_bytes=vmem_limit,
        ),
        cost_estimate=pl.CostEstimate(
            flops=flops, transcendentals=0, bytes_accessed=bytes_accessed
        ),
    )(xp, w1_t, b1_p, w3_t, b3_p)

    # Drop batch padding (output is already narrow in C).
    return out[:B]


def mlp_forward(x, w1, b1, w3, b3, *, block_b: int = 4096):
    """Convenience wrapper: pad params then run the kernel (prefer the prepared path)."""
    params, dims = prepare_mlp_params(w1, b1, w3, b3)
    return mlp_forward_prepared(x, params, dims=dims, block_b=block_b)


def _ref_mlp(x, w1, b1, w3, b3):
    return jnp.maximum(x @ w1.T + b1, 0.0) @ w3.T + b3


if __name__ == "__main__":
    # Module config: MLP(num_classes, input_size); hidden is fixed at 10.
    input_size = 16
    hidden = 10
    num_classes = 4

    key = jax.random.PRNGKey(0)
    kx, kw1, kb1, kw3, kb3, kx2 = jax.random.split(key, 6)

    # PyTorch nn.Linear layout: W is (out_features, in_features).
    w1 = jax.random.normal(kw1, (hidden, input_size), dtype=jnp.float32) * 0.1
    b1 = jax.random.normal(kb1, (hidden,), dtype=jnp.float32) * 0.1
    w3 = jax.random.normal(kw3, (num_classes, hidden), dtype=jnp.float32) * 0.1
    b3 = jax.random.normal(kb3, (num_classes,), dtype=jnp.float32) * 0.1

    # Pad weights once (hoisted out of the per-call path).
    params, dims = prepare_mlp_params(w1, b1, w3, b3)

    # --- small batch (single grid step) ---
    x_small = jax.random.normal(kx, (8, input_size), dtype=jnp.float32)
    out_small = jax.block_until_ready(
        mlp_forward_prepared(x_small, params, dims=dims)
    )
    ref_small = _ref_mlp(x_small, w1, b1, w3, b3)
    assert out_small.shape == (8, num_classes)
    assert jnp.allclose(out_small, ref_small, atol=1e-5, rtol=1e-5)

    # --- larger, non-multiple-of-tile batch (multi-step pipelined grid) ---
    x_big = jax.random.normal(kx2, (300, input_size), dtype=jnp.float32)
    out_big = jax.block_until_ready(
        mlp_forward_prepared(x_big, params, dims=dims, block_b=128)
    )
    ref_big = _ref_mlp(x_big, w1, b1, w3, b3)
    assert out_big.shape == (300, num_classes)
    assert jnp.allclose(out_big, ref_big, atol=1e-5, rtol=1e-5)

    print("KERNEL_OK")
</pallas_src>

<mosaic_0001>
module attributes {stable_mosaic.version = 11 : i64} {
  func.func @_mlp_kernel(%arg0: i32, %arg1: memref<8x16xf32, #tpu.memory_space<vmem>>, %arg2: memref<16x128xf32, #tpu.memory_space<vmem>>, %arg3: memref<1x128xf32, #tpu.memory_space<vmem>>, %arg4: memref<128x128xf32, #tpu.memory_space<vmem>>, %arg5: memref<1x128xf32, #tpu.memory_space<vmem>>, %arg6: memref<8x4xf32, #tpu.memory_space<vmem>>) attributes {dimension_semantics = [#tpu.dimension_semantics<parallel>], iteration_bounds = array<i64: 1>, scalar_prefetch = 0 : i64, scratch_operands = 0 : i64, tpu.core_type = #tpu.core_type<tc>, window_params = [{transform_indices = @transform_0, window_bounds = array<i64: 8, 16>}, {pipeline_mode = #tpu.pipeline_mode<synchronous>, transform_indices = @transform_1, window_bounds = array<i64: 16, 128>}, {pipeline_mode = #tpu.pipeline_mode<synchronous>, transform_indices = @transform_2, window_bounds = array<i64: 1, 128>}, {pipeline_mode = #tpu.pipeline_mode<synchronous>, transform_indices = @transform_3, window_bounds = array<i64: 128, 128>}, {pipeline_mode = #tpu.pipeline_mode<synchronous>, transform_indices = @transform_4, window_bounds = array<i64: 1, 128>}, {transform_indices = @transform_5, window_bounds = array<i64: 8, 4>}]} {
    %c0 = arith.constant 0 : index
    %c0_0 = arith.constant 0 : index
    %0 = vector.load %arg1[%c0, %c0_0] : memref<8x16xf32, #tpu.memory_space<vmem>>, vector<8x16xf32>
    %c0_1 = arith.constant 0 : index
    %c0_2 = arith.constant 0 : index
    %1 = vector.load %arg2[%c0_1, %c0_2] : memref<16x128xf32, #tpu.memory_space<vmem>>, vector<16x128xf32>
    %cst = arith.constant dense<0.000000e+00> : vector<8x128xf32>
    %2 = tpu.matmul %0, %1, %cst {dimension_numbers = #tpu.dot_dimension_numbers<[1], [0], [0], [1], [0, 0, 1, 1], [], []>} : vector<8x16xf32>, vector<16x128xf32>, vector<8x128xf32> -> vector<8x128xf32>
    %c0_3 = arith.constant 0 : index
    %c0_4 = arith.constant 0 : index
    %3 = vector.load %arg3[%c0_3, %c0_4] : memref<1x128xf32, #tpu.memory_space<vmem>>, vector<1x128xf32>
    %4 = vector.broadcast %3 : vector<1x128xf32> to vector<8x128xf32>
    %5 = arith.addf %2, %4 : vector<8x128xf32>
    %cst_5 = arith.constant 0.000000e+00 : f32
    %6 = vector.broadcast %cst_5 : f32 to vector<8x128xf32>
    %7 = arith.maximumf %5, %6 : vector<8x128xf32>
    %c0_6 = arith.constant 0 : index
    %c0_7 = arith.constant 0 : index
    %8 = vector.load %arg4[%c0_6, %c0_7] : memref<128x128xf32, #tpu.memory_space<vmem>>, vector<128x128xf32>
    %cst_8 = arith.constant dense<0.000000e+00> : vector<8x128xf32>
    %9 = tpu.matmul %7, %8, %cst_8 {dimension_numbers = #tpu.dot_dimension_numbers<[1], [0], [0], [1], [0, 0, 1, 1], [], []>} : vector<8x128xf32>, vector<128x128xf32>, vector<8x128xf32> -> vector<8x128xf32>
    %c0_9 = arith.constant 0 : index
    %c0_10 = arith.constant 0 : index
    %10 = vector.load %arg5[%c0_9, %c0_10] : memref<1x128xf32, #tpu.memory_space<vmem>>, vector<1x128xf32>
    %11 = vector.broadcast %10 : vector<1x128xf32> to vector<8x128xf32>
    %12 = arith.addf %9, %11 : vector<8x128xf32>
    %13 = vector.extract_strided_slice %12 {offsets = [0, 0], sizes = [8, 4], strides = [1, 1]} : vector<8x128xf32> to vector<8x4xf32>
    %c0_11 = arith.constant 0 : index
    %c0_12 = arith.constant 0 : index
    %14 = vector.load %arg6[%c0_11, %c0_12] : memref<8x4xf32, #tpu.memory_space<vmem>>, vector<8x4xf32>
    tpu.vector_store %arg6[%c0_11, %c0_12], %13 {strides = array<i32>} : memref<8x4xf32, #tpu.memory_space<vmem>>, vector<8x4xf32>,
    return
  }
  func.func @transform_0(%arg0: i32) -> (i32, i32) {
    %c0_i32 = arith.constant 0 : i32
    %c0_i32_0 = arith.constant 0 : i32
    return %arg0, %c0_i32 : i32, i32
  }
  func.func @transform_1(%arg0: i32) -> (i32, i32) {
    %c0_i32 = arith.constant 0 : i32
    %c0_i32_0 = arith.constant 0 : i32
    %c0_i32_1 = arith.constant 0 : i32
    return %c0_i32, %c0_i32_0 : i32, i32
  }
  func.func @transform_2(%arg0: i32) -> (i32, i32) {
    %c0_i32 = arith.constant 0 : i32
    %c0_i32_0 = arith.constant 0 : i32
    %c0_i32_1 = arith.constant 0 : i32
    return %c0_i32, %c0_i32_0 : i32, i32
  }
  func.func @transform_3(%arg0: i32) -> (i32, i32) {
    %c0_i32 = arith.constant 0 : i32
    %c0_i32_0 = arith.constant 0 : i32
    %c0_i32_1 = arith.constant 0 : i32
    return %c0_i32, %c0_i32_0 : i32, i32
  }
  func.func @transform_4(%arg0: i32) -> (i32, i32) {
    %c0_i32 = arith.constant 0 : i32
    %c0_i32_0 = arith.constant 0 : i32
    %c0_i32_1 = arith.constant 0 : i32
    return %c0_i32, %c0_i32_0 : i32, i32
  }
  func.func @transform_5(%arg0: i32) -> (i32, i32) {
    %c0_i32 = arith.constant 0 : i32
    %c0_i32_0 = arith.constant 0 : i32
    return %arg0, %c0_i32 : i32, i32
  }
}

</mosaic_0001>

<bundles_post_ra>
// kernel: mlp_forward_prepared.1
= control target key start
LH: loop header
LB: loop body
LE: loop exit
PB: predicated region body
PF: predicated region fallthrough
CT: control target
= control target key end

     0   :  { %10 = vsyncpa [#allocation3], 0  ;;  %s282_s0 = inlined_call_operand.hbm [shape: f32[8,16], index: 0, kind: input, shape index: {}]   ;;  %s283_s1 = inlined_call_operand.hbm [shape: f32[16,128], index: 1, kind: input, shape index: {}]   ;;  %s284_s2 = inlined_call_operand.vmem [shape: f32[1,128], index: 2, kind: input, shape index: {}]   ;;  %s285_s3 = inlined_call_operand.hbm [shape: f32[128,128], index: 3, kind: input, shape index: {}]   ;;  %s286_s4 = inlined_call_operand.vmem [shape: f32[1,128], index: 4, kind: input, shape index: {}]   ;;  %s287_s5 = inlined_call_operand.vmem [shape: f32[8,4], index: 5, kind: output, shape index: {}]  }
   0x1   :  { %11 = vsyncpa [#allocation5], 0  ;;  %s27_s20 = sshll.u32 %s283_s1, 4  ;;  %s229_s21 = smov [#allocation4]   ;;  %s28_s20 = int_to_ptr.hbm [resolvable:$true] %s27_s20 }
   0x2   :  { %s29_s22 = sshll.u32 %s229_s21, 4  ;;  %s17_s25 = sshll.u32 %s282_s0, 4  ;;  %s30_s22 = int_to_ptr.vmem [resolvable:$true] %s29_s22  ;;  %s18_s25 = int_to_ptr.hbm [resolvable:$true] %s17_s25 }
   0x3   :  { %s230_s26 = smov 128   ;;  %s231_s27 = smov 8  }
   0x4   :  { %35 = dma.hbm_to_vmem [thread:$0]  %s28_s20, 256, %s30_s22, [#allocation5], %s230_s26, %s230_s26, %s231_s27  }
   0x5   :  { %s232_s28 = smov [#allocation2]   ;;  %s42_s7 = sshll.u32 %s285_s3, 4  ;;  %s43_s7 = int_to_ptr.hbm [resolvable:$true] %s42_s7 }
   0x6   :  { %s19_s29 = sshll.u32 %s232_s28, 4  ;;  %s233_s1 = smov [#allocation6]   ;;  %s20_s29 = int_to_ptr.vmem [resolvable:$true] %s19_s29 }
   0x7   :  { %22 = dma.hbm_to_vmem [thread:$0]  %s18_s25, 128, %s20_s29, [#allocation3]  }
   0x8   :  { %s44_s8 = sshll.u32 %s233_s1, 4  ;;  %s45_s8 = int_to_ptr.vmem [resolvable:$true] %s44_s8 }
   0x9   :  { %50 = dma.hbm_to_vmem [thread:$0]  %s43_s7, 2048, %s45_s8, [#allocation5], %s230_s26, %s230_s26, %s231_s27  }
   0xa   :  { %225 = dma.done.wait [#allocation3], 128  }
   0xb   :  { %226 = vsyncadd [#allocation3], 4294967168 }
   0xc   :  { %227 = dma.done.wait [#allocation5], 2304  }
   0xd   :  { %228 = vsyncadd [#allocation5], 4294964992  ;;  %v67_v0 = vld [vmem:[#allocation4 + $0x8] sm:$0xff]  ;;  %v66_v1 = vld [vmem:[#allocation4] sm:$0xff]  ;;  %vm72_vm0 = vcmask 130048   ;;  %vm137_vm1 = vcmask 31744  }
   0xe   :  { %90 = vmatpush.msra.mxu0 %v67_v0  ;;  %v65_v2 = vld [vmem:[#allocation2] sm:$0xff]  ;;  %v112_v3 = vld [vmem:[#allocation6 + $0x78] sm:$0xff]  ;;  %v111_v4 = vld [vmem:[#allocation6 + $0x70] sm:$0xff] }
   0xf   :  { %117 = vmatpush.msra.mxu1 %v112_v3  ;;  %v110_v5 = vld [vmem:[#allocation6 + $0x68] sm:$0xff]  ;;  %v109_v6 = vld [vmem:[#allocation6 + $0x60] sm:$0xff]  ;;  %v108_v7 = vld [vmem:[#allocation6 + $0x58] sm:$0xff] }
  0x10   :  { %91 = vmatpush.msra.mxu0 %v66_v1  ;;  %v107_v8 = vld [vmem:[#allocation6 + $0x50] sm:$0xff]  ;;  %v106_v9 = vld [vmem:[#allocation6 + $0x48] sm:$0xff]  ;;  %v105_v10 = vld [vmem:[#allocation6 + $0x40] sm:$0xff] }
  0x11   :  { %145 = vmatmul.msk.f32.vlgmr.msra.gmra.mxu0 %vm72_vm0, %v65_v2  ;;  %118 = vmatpush.msra.mxu1 %v111_v4  ;;  %v104_v11 = vld [vmem:[#allocation6 + $0x38] sm:$0xff]  ;;  %v103_v12 = vld [vmem:[#allocation6 + $0x30] sm:$0xff]  ;;  %v102_v13 = vld [vmem:[#allocation6 + $0x28] sm:$0xff] }
  0x12   :  { %v101_v14 = vld [vmem:[#allocation6 + $0x20] sm:$0xff]  ;;  %v100_v15 = vld [vmem:[#allocation6 + $0x18] sm:$0xff]  ;;  %v99_v16 = vld [vmem:[#allocation6 + $0x10] sm:$0xff] }
  0x13   :  { %119 = vmatpush.msra.mxu1 %v110_v5  ;;  %v98_v17 = vld [vmem:[#allocation6 + $0x8] sm:$0xff]  ;;  %v97_v18 = vld [vmem:[#allocation6] sm:$0xff] }
  0x14   :  { %v151_v19 = vld [vmem:[%s284_s2] ss:$0 sm:$0xff] }
  0x15   :  { %120 = vmatpush.msra.mxu1 %v109_v6  ;;  %v152_v23 = vld [vmem:[%s286_s4] ss:$0 sm:$0xff] }
  0x17   :  { %121 = vmatpush.msra.mxu1 %v108_v7 }
  0x19   :  { %122 = vmatpush.msra.mxu1 %v107_v8 }
  0x1b   :  { %123 = vmatpush.msra.mxu1 %v106_v9 }
  0x1d   :  { %124 = vmatpush.msra.mxu1 %v105_v10 }
  0x1f   :  { %125 = vmatpush.msra.mxu1 %v104_v11 }
  0x21   :  { %126 = vmatpush.msra.mxu1 %v103_v12 }
  0x23   :  { %127 = vmatpush.msra.mxu1 %v102_v13 }
  0x25   :  { %128 = vmatpush.msra.mxu1 %v101_v14 }
  0x27   :  { %129 = vmatpush.msra.mxu1 %v100_v15 }
  0x29   :  { %130 = vmatpush.msra.mxu1 %v99_v16 }
  0x2b   :  { %131 = vmatpush.msra.mxu1 %v98_v17 }
  0x2d   :  { %132 = vmatpush.msra.mxu1 %v97_v18 }
  0x8e   :  { %v93_v20 = vpop.f32.mrf.mxu0 }
  0x8f   :  { %v94_v21 = vadd.f32 %v151_v19, %v93_v20 }
  0x91   :  { %v96_v22 = vmax.f32 %v94_v21, 0.0 }
  0x93   :  { %133 = vmatmul.f32.vlgmr.msra.gmra.mxu1 %v96_v22 }
 0x110   :  { %v134_v24 = vpop.f32.mrf.mxu1 }
 0x111   :  { %v135_v25 = vadd.f32 %v152_v23, %v134_v24 }
 0x113   :  { %138 = vst.msk [vmem:[%s287_s5] sm:$0xff] %vm137_vm1, %v135_v25 }
 0x114   :  { %143 = vsyncpa [#allocation3], 1 }
 0x115   :  { %144 = vsyncpa [#allocation5], 1 }

</bundles_post_ra>
